<compile_context>
chip_gen: v6e
topology: v6e:2x2x1
jax: 0.10.0
libtpu: 0.0.40
codegen_flags: <defaults>
</compile_context>

<pallas_src>
import jax
import jax.numpy as jnp
import numpy as np
from jax.experimental import pallas as pl
from jax.experimental.pallas import tpu as pltpu

T, C, L = 501, 30, 4          # seq len, num classes, num loc coords (fixed by the module)
EPS = 1e-12
STRUCTURE_WEIGHT = 1.0
LOC_WEIGHT = 2.0

# Packed-slab row layout (all f32; lane axis = sequence T, sublanes = feature rows).
ROW_LOGITS = 0                # rows [0, 30)  : structure logits (classes on sublanes)
ROW_TGT    = C                # row  30       : structure target ids (exact small ints in f32)
ROW_MASK   = C + 1            # row  31       : loc target mask
ROW_LOCP   = C + 2            # rows [32, 36) : loc predictions (8-aligned sublane offset)
ROW_LOCT   = C + 2 + L        # rows [36, 40) : loc targets
N_ROWS     = C + 2 + 2 * L    # 40


def _sla_loss_kernel(slab_ref, out_ref):
    # ---- structure branch: mean cross-entropy over the 501 sequence positions ----
    logits = slab_ref[ROW_LOGITS:ROW_LOGITS + C, :]                  # (30, T), lane-dense
    tgt = slab_ref[ROW_TGT:ROW_TGT + 1, :].astype(jnp.int32)         # (1, T)

    m = jnp.max(logits, axis=0, keepdims=True)                       # (1, T)
    lse = jnp.log(jnp.sum(jnp.exp(logits - m), axis=0, keepdims=True)) + m

    cls_idx = jax.lax.broadcasted_iota(jnp.int32, (C, T), 0)         # class id per sublane
    tgt_logit = jnp.sum(jnp.where(cls_idx == tgt, logits, 0.0),
                        axis=0, keepdims=True)                       # (1, T)

    ce = lse - tgt_logit                                             # (1, T)
    structure_loss = jnp.sum(ce, axis=-1, keepdims=True) * (STRUCTURE_WEIGHT / T)  # (1,1)

    # ---- loc branch: smooth-L1 (beta=1) on masked preds/targets ----
    mask = slab_ref[ROW_MASK:ROW_MASK + 1, :]                        # (1, T)
    d = (slab_ref[ROW_LOCP:ROW_LOCP + L, :]
         - slab_ref[ROW_LOCT:ROW_LOCT + L, :]) * mask                # factored mask multiply
    ad = jnp.abs(d)
    elem = jnp.where(ad < 1.0, 0.5 * d * d, ad - 0.5)                # (L, T)
    loc_sum = jnp.sum(elem, keepdims=True)                           # (1, 1)
    mask_sum = jnp.sum(mask, axis=-1, keepdims=True)                 # (1, 1)
    loc_loss = loc_sum * (LOC_WEIGHT / (T * L)) / (mask_sum + EPS)

    # TODO(synk): review suggested fusing the three reductions into one XLU tree and an
    # SMEM scalar output; skipped (micro-win) in favor of guaranteed clean lowering.
    out_ref[...] = structure_loss + loc_loss


_COST = pl.CostEstimate(
    flops=6 * C * T + 10 * L * T,
    transcendentals=(C + 1) * T,
    bytes_accessed=(N_ROWS * T + 1) * 4,
)


@jax.jit
def sla_loss(structure_logits, loc_preds, structure_target, loc_targets, loc_target_mask):
    """structure_logits: (1,T,C) f32, loc_preds: (1,T,4) f32,
    structure_target: (1,T) int32 in [0,30), loc_targets: (1,T,4), loc_target_mask: (1,T,1)."""
    # One lane-dense packed slab (~80 KiB); target ids in [0,30) are exact in f32.
    slab = jnp.concatenate(
        [
            structure_logits.reshape(T, C).astype(jnp.float32).T,    # (30, T)
            structure_target.reshape(1, T).astype(jnp.float32),      # (1, T)
            loc_target_mask.reshape(1, T).astype(jnp.float32),       # (1, T)
            loc_preds.reshape(T, L).astype(jnp.float32).T,           # (4, T)
            loc_targets.reshape(T, L).astype(jnp.float32).T,         # (4, T)
        ],
        axis=0,
    )                                                                # (40, T)

    out = pl.pallas_call(
        _sla_loss_kernel,
        out_shape=jax.ShapeDtypeStruct((1, 1), jnp.float32),
        in_specs=[pl.BlockSpec(memory_space=pltpu.MemorySpace.VMEM)],
        out_specs=pl.BlockSpec(memory_space=pltpu.MemorySpace.VMEM),
        compiler_params=pltpu.CompilerParams(allow_input_fusion=[True]),
        cost_estimate=_COST,
    )(slab)
    return out[0, 0]


if __name__ == "__main__":
    key = jax.random.PRNGKey(0)
    k1, k2, k3, k4, k5 = jax.random.split(key, 5)

    # pred[0], pred[1] from the SLAHead (synthetic logits / loc regressions)
    structure_logits = jax.random.normal(k1, (1, T, C), jnp.float32)
    loc_preds = jax.random.normal(k2, (1, T, L), jnp.float32)
    # TODO(synk): the torch module draws target/loc_targets/mask with torch RNG inside
    # forward(); generated deterministically here with jax.random and passed as inputs.
    structure_target = jax.random.randint(k3, (1, T), 0, 30, jnp.int32)
    loc_targets = jax.random.normal(k4, (1, T, L), jnp.float32)
    loc_target_mask = jax.random.normal(k5, (1, T, 1), jnp.float32)

    total = sla_loss(structure_logits, loc_preds, structure_target,
                     loc_targets, loc_target_mask)
    total = jax.block_until_ready(total)

    # plain-JAX reference of the same math
    lse = jax.scipy.special.logsumexp(structure_logits, axis=-1)                      # (1,T)
    tl = jnp.take_along_axis(structure_logits, structure_target[..., None], axis=-1)[..., 0]
    structure_ref = jnp.mean(lse - tl) * STRUCTURE_WEIGHT
    xm = loc_preds * loc_target_mask
    ym = loc_targets * loc_target_mask
    d = xm - ym
    ad = jnp.abs(d)
    elem = jnp.where(ad < 1.0, 0.5 * d * d, ad - 0.5)
    loc_ref = jnp.mean(elem) * LOC_WEIGHT / (jnp.sum(loc_target_mask) + EPS)
    ref = structure_ref + loc_ref

    assert np.allclose(np.asarray(total), np.asarray(ref), rtol=1e-5, atol=1e-5), (total, ref)
    print("KERNEL_OK")
</pallas_src>

<mosaic_0001>
module attributes {stable_mosaic.version = 11 : i64} {
  func.func @_sla_loss_kernel(%arg0: memref<40x501xf32, #tpu.memory_space<vmem>>, %arg1: memref<1x1xf32, #tpu.memory_space<vmem>>) attributes {dimension_semantics = [], scalar_prefetch = 0 : i64, scratch_operands = 0 : i64, tpu.core_type = #tpu.core_type<tc>} {
    %c0 = arith.constant 0 : index
    %c0_0 = arith.constant 0 : index
    %0 = vector.load %arg0[%c0, %c0_0] : memref<40x501xf32, #tpu.memory_space<vmem>>, vector<30x501xf32>
    %c30 = arith.constant 30 : index
    %c0_1 = arith.constant 0 : index
    %1 = vector.load %arg0[%c30, %c0_1] : memref<40x501xf32, #tpu.memory_space<vmem>>, vector<1x501xf32>
    %2 = arith.fptosi %1 : vector<1x501xf32> to vector<1x501xi32>
    %cst = arith.constant dense<0xFF800000> : vector<501xf32>
    %3 = vector.multi_reduction <maximumf>, %0, %cst [0] : vector<30x501xf32> to vector<501xf32>
    %4 = vector.shape_cast %3 : vector<501xf32> to vector<1x501xf32>
    %5 = vector.broadcast %4 : vector<1x501xf32> to vector<30x501xf32>
    %6 = arith.subf %0, %5 : vector<30x501xf32>
    %7 = math.exp %6 : vector<30x501xf32>
    %cst_2 = arith.constant dense<0.000000e+00> : vector<501xf32>
    %8 = vector.multi_reduction <add>, %7, %cst_2 [0] : vector<30x501xf32> to vector<501xf32>
    %9 = vector.shape_cast %8 : vector<501xf32> to vector<1x501xf32>
    %10 = math.log %9 : vector<1x501xf32>
    %11 = arith.addf %10, %4 : vector<1x501xf32>
    %12 = tpu.iota {dimensions = array<i32: 0>} : vector<30x501xi32>
    %13 = vector.broadcast %2 : vector<1x501xi32> to vector<30x501xi32>
    %14 = arith.cmpi eq, %12, %13 : vector<30x501xi32>
    %cst_3 = arith.constant 0.000000e+00 : f32
    %15 = vector.broadcast %cst_3 : f32 to vector<30x501xf32>
    %16 = arith.select %14, %0, %15 : vector<30x501xi1>, vector<30x501xf32>
    %cst_4 = arith.constant dense<0.000000e+00> : vector<501xf32>
    %17 = vector.multi_reduction <add>, %16, %cst_4 [0] : vector<30x501xf32> to vector<501xf32>
    %18 = vector.shape_cast %17 : vector<501xf32> to vector<1x501xf32>
    %19 = arith.subf %11, %18 : vector<1x501xf32>
    %cst_5 = arith.constant dense<0.000000e+00> : vector<1xf32>
    %20 = vector.multi_reduction <add>, %19, %cst_5 [1] : vector<1x501xf32> to vector<1xf32>
    %21 = vector.shape_cast %20 : vector<1xf32> to vector<1x1xf32>
    %cst_6 = arith.constant 0.00199600798 : f32
    %22 = vector.broadcast %cst_6 : f32 to vector<1x1xf32>
    %23 = arith.mulf %21, %22 : vector<1x1xf32>
    %c31 = arith.constant 31 : index
    %c0_7 = arith.constant 0 : index
    %24 = vector.load %arg0[%c31, %c0_7] : memref<40x501xf32, #tpu.memory_space<vmem>>, vector<1x501xf32>
    %c32 = arith.constant 32 : index
    %c0_8 = arith.constant 0 : index
    %25 = vector.load %arg0[%c32, %c0_8] : memref<40x501xf32, #tpu.memory_space<vmem>>, vector<4x501xf32>
    %c36 = arith.constant 36 : index
    %c0_9 = arith.constant 0 : index
    %26 = vector.load %arg0[%c36, %c0_9] : memref<40x501xf32, #tpu.memory_space<vmem>>, vector<4x501xf32>
    %27 = arith.subf %25, %26 : vector<4x501xf32>
    %28 = vector.broadcast %24 : vector<1x501xf32> to vector<4x501xf32>
    %29 = arith.mulf %27, %28 : vector<4x501xf32>
    %30 = math.absf %29 : vector<4x501xf32>
    %cst_10 = arith.constant 1.000000e+00 : f32
    %31 = vector.broadcast %cst_10 : f32 to vector<4x501xf32>
    %32 = arith.cmpf olt, %30, %31 : vector<4x501xf32>
    %cst_11 = arith.constant 5.000000e-01 : f32
    %33 = vector.broadcast %cst_11 : f32 to vector<4x501xf32>
    %34 = arith.mulf %33, %29 : vector<4x501xf32>
    %35 = arith.mulf %34, %29 : vector<4x501xf32>
    %cst_12 = arith.constant 5.000000e-01 : f32
    %36 = vector.broadcast %cst_12 : f32 to vector<4x501xf32>
    %37 = arith.subf %30, %36 : vector<4x501xf32>
    %38 = arith.select %32, %35, %37 : vector<4x501xi1>, vector<4x501xf32>
    %39 = vector.shape_cast %38 : vector<4x501xf32> to vector<1x4x501xf32>
    %cst_13 = arith.constant dense<0.000000e+00> : vector<1xf32>
    %40 = vector.multi_reduction <add>, %39, %cst_13 [1, 2] : vector<1x4x501xf32> to vector<1xf32>
    %41 = vector.shape_cast %40 : vector<1xf32> to vector<1x1x1xf32>
    %42 = vector.extract %41[0, 0, 0] : f32 from vector<1x1x1xf32>
    %43 = vector.broadcast %42 : f32 to vector<1x1xf32>
    %cst_14 = arith.constant dense<0.000000e+00> : vector<1xf32>
    %44 = vector.multi_reduction <add>, %24, %cst_14 [1] : vector<1x501xf32> to vector<1xf32>
    %45 = vector.shape_cast %44 : vector<1xf32> to vector<1x1xf32>
    %cst_15 = arith.constant 9.9800399E-4 : f32
    %46 = vector.broadcast %cst_15 : f32 to vector<1x1xf32>
    %47 = arith.mulf %43, %46 : vector<1x1xf32>
    %cst_16 = arith.constant 9.99999996E-13 : f32
    %48 = vector.broadcast %cst_16 : f32 to vector<1x1xf32>
    %49 = arith.addf %45, %48 : vector<1x1xf32>
    %50 = arith.divf %47, %49 : vector<1x1xf32>
    %51 = arith.addf %23, %50 : vector<1x1xf32>
    %c0_17 = arith.constant 0 : index
    %c0_18 = arith.constant 0 : index
    %52 = vector.load %arg1[%c0_17, %c0_18] : memref<1x1xf32, #tpu.memory_space<vmem>>, vector<1x1xf32>
    tpu.vector_store %arg1[%c0_17, %c0_18], %51 {strides = array<i32>} : memref<1x1xf32, #tpu.memory_space<vmem>>, vector<1x1xf32>,
    return
  }
}

</mosaic_0001>

<bundles_post_ra>
// kernel: sla_loss.1
= control target key start
LH: loop header
LB: loop body
LE: loop exit
PB: predicated region body
PF: predicated region fallthrough
CT: control target
= control target key end

     0   :  { %v177_v0 = vlaneseq  ;;  %vm359_vm0 = vcmask 1043456   ;;  %vm365_vm1 = vcmask 953344   ;;  %vm378_vm2 = vcmask 1040384   ;;  %s867_s0 = inlined_call_operand.vmem [shape: f32[40,501], index: 0, kind: input, shape index: {}]   ;;  %s868_s1 = inlined_call_operand.hbm [shape: f32[1,1], index: 1, kind: output, shape index: {}]  }
   0x1   :  { %v411_v1 = vld [vmem:[%s867_s0 + $0x67] ss:$8 sm:$0xf]  ;;  %v286_v2 = vld [vmem:[%s867_s0 + $0x80] sm:$0xf] }
   0x2   :  { %v287_v3 = vld [vmem:[%s867_s0 + $0x88] sm:$0xf]  ;;  %v505_v4 = vshrl.u32 %v177_v0, 7  ;;  %v288_v5 = vld [vmem:[%s867_s0 + $0x90] sm:$0xf] }
   0x3   :  { %v290_v6 = vld [vmem:[%s867_s0 + $0x80] sm:$0xf0]  ;;  %v291_v7 = vld [vmem:[%s867_s0 + $0x88] sm:$0xf0]  ;;  %v292_v8 = vld [vmem:[%s867_s0 + $0x90] sm:$0xf0] }
   0x4   :  { %v293_v9 = vld [vmem:[%s867_s0 + $0x98] sm:$0xf0]  ;;  %v298_v10 = vrot.slane %v290_v6, 4  ;;  %v299_v11 = vrot.slane %v291_v7, 4  ;;  %v184_v12 = vsub.s32 0, %v505_v4  ;;  %v188_v13 = vsub.s32 1, %v505_v4 }
   0x5   :  { %v192_v14 = vsub.s32 2, %v505_v4  ;;  %v196_v15 = vsub.s32 3, %v505_v4  ;;  %v289_v16 = vld [vmem:[%s867_s0 + $0x98] sm:$0xf]  ;;  %v300_v17 = vrot.slane %v292_v8, 4  ;;  %v301_v18 = vrot.slane %v293_v9, 4 }
   0x6   :  { %v306_v19 = vsub.f32 %v286_v2, %v298_v10  ;;  %v307_v20 = vsub.f32 %v287_v3, %v299_v11  ;;  %v410_v21 = vld [vmem:[%s867_s0 + $0x66] ss:$8 sm:$0xf]  ;;  %v314_v22 = vrot.slane %v411_v1, %v184_v12  ;;  %v318_v23 = vrot.slane %v411_v1, %v188_v13 }
   0x7   :  { %v322_v24 = vrot.slane %v411_v1, %v192_v14  ;;  %v532_v25 = vrot.slane %v411_v1, %v196_v15  ;;  %v308_v26 = vsub.f32 %v288_v5, %v300_v17  ;;  %v309_v27 = vsub.f32 %v289_v16, %v301_v18 }
   0x8   :  { %v416_v28 = vtrunc.f32 %v410_v21  ;;  %v331_v29 = vmul.f32 %v314_v22, %v306_v19  ;;  %v332_v30 = vmul.f32 %v318_v23, %v307_v20  ;;  %v379_v31 = vsel %vm378_vm2, %v314_v22, 0.0 }
   0x9   :  { %v380_v32 = vsel %vm378_vm2, %v318_v23, 0.0  ;;  %v333_v33 = vmul.f32 %v322_v24, %v308_v26  ;;  %v334_v34 = vmul.f32 %v532_v25, %v309_v27 }
   0xa   :  { %v417_v35 = vcvt.f32.s32 %v416_v28  ;;  %v381_v36 = vadd.f32 %v380_v32, %v379_v31  ;;  %v335_v37 = vand.u32 2147483647, %v331_v29  ;;  %v336_v38 = vand.u32 2147483647, %v332_v30 }
   0xb   :  { %v343_v39 = vmul.f32 0.5, %v331_v29  ;;  %v344_v40 = vmul.f32 0.5, %v332_v30  ;;  %v337_v41 = vand.u32 2147483647, %v333_v33  ;;  %v338_v42 = vand.u32 2147483647, %v334_v34 }
   0xc   :  { %v345_v43 = vmul.f32 0.5, %v333_v33  ;;  %v346_v44 = vmul.f32 0.5, %v334_v34  ;;  %vm537_vm3 = vcmp.lt.f32.partialorder %v335_v37, 1.0  ;;  %vm541_vm4 = vcmp.lt.f32.partialorder %v336_v38, 1.0 }
   0xd   :  { %v347_v47 = vmul.f32 %v343_v39, %v331_v29  ;;  %v348_v48 = vmul.f32 %v344_v40, %v332_v30 }
   0xe   :  { %6 = vsyncpa [#allocation3], 0  ;;  %vm545_vm5 = vcmp.lt.f32.partialorder %v337_v41, 1.0  ;;  %vm549_vm6 = vcmp.lt.f32.partialorder %v338_v42, 1.0  ;;  %v349_v51 = vmul.f32 %v345_v43, %v333_v33  ;;  %v350_v52 = vmul.f32 %v346_v44, %v334_v34  ;;  %v564_v61 = vld [vmem:[%s867_s0] sm:$0xff]  ;;  %v569_v62 = vld [vmem:[%s867_s0 + $0x8] sm:$0xff] }
   0xf   :  { %v412_v53 = vadd.f32 -0.5, %v335_v37  ;;  %v413_v54 = vadd.f32 -0.5, %v336_v38  ;;  %v414_v55 = vadd.f32 -0.5, %v337_v41  ;;  %v415_v56 = vadd.f32 -0.5, %v338_v42  ;;  %v574_v63 = vld [vmem:[%s867_s0 + $0x20] sm:$0xff]  ;;  %v587_v5 = vld [vmem:[%s867_s0 + $0x10] sm:$0xff] }
  0x10   :  { %v553_v57 = vrot.slane %v417_v35, %v184_v12  ;;  %v555_v58 = vrot.slane %v417_v35, %v188_v13  ;;  %v557_v59 = vrot.slane %v417_v35, %v192_v14  ;;  %v559_v60 = vrot.slane %v417_v35, %v196_v15  ;;  %v592_v6 = vld [vmem:[%s867_s0 + $0x28] sm:$0xff]  ;;  %v597_v7 = vld [vmem:[%s867_s0 + $0x40] sm:$0xff]  ;;  %v617_v16 = vld [vmem:[%s867_s0 + $0x30] sm:$0xff]  ;;  %s485_s29 = smov [#allocation2]  }
  0x11   :  { %v355_v0 = vsel %vm537_vm3, %v347_v47, %v412_v53  ;;  %v356_v1 = vsel %vm541_vm4, %v348_v48, %v413_v54  ;;  %v357_v2 = vsel %vm545_vm5, %v349_v51, %v414_v55  ;;  %v358_v3 = vsel %vm549_vm6, %v350_v52, %v415_v56  ;;  %v602_v8 = vld [vmem:[%s867_s0 + $0x60] sm:$0x3f]  ;;  %v611_v13 = vld [vmem:[%s867_s0 + $0x68] sm:$0x3f]  ;;  %v627_v18 = vld [vmem:[%s867_s0 + $0x70] sm:$0x3f] }
  0x12   :  { %v360_v9 = vsel %vm359_vm0, %v355_v0, 0.0  ;;  %v361_v10 = vsel %vm359_vm0, %v356_v1, 0.0  ;;  %v363_v11 = vsel %vm359_vm0, %v357_v2, 0.0  ;;  %v366_v12 = vsel %vm365_vm1, %v358_v3, 0.0  ;;  %v622_v17 = vld [vmem:[%s867_s0 + $0x48] sm:$0xff]  ;;  %v642_v26 = vld [vmem:[%s867_s0 + $0x38] sm:$0xff] }
  0x13   :  { %v362_v14 = vadd.f32 %v361_v10, %v360_v9  ;;  %v382_v15 = vsel %vm378_vm2, %v322_v24, 0.0  ;;  %vm384_vm7 = vcmask 950272   ;;  %v28_v19 = vmax.f32 %v564_v61, %v574_v63  ;;  %v637_v24 = vld [vmem:[%s867_s0 + $0x18] sm:$0xff]  ;;  %v647_v27 = vld [vmem:[%s867_s0 + $0x50] sm:$0xff]  ;;  %s402_s30 = sshll.u32 %s485_s29, 4  ;;  %s403_s30 = int_to_ptr.vmem [resolvable:$true] %s402_s30 }
  0x14   :  { %v383_v20 = vadd.f32 %v382_v15, %v381_v36  ;;  %v385_v21 = vsel %vm384_vm7, %v532_v25, 0.0  ;;  %vm871_vm8 = vcmask 1045504   ;;  %v39_v22 = vmax.f32 %v569_v62, %v592_v6  ;;  %v657_v31 = vld [vmem:[%s867_s0 + $0x58] sm:$0xff]  ;;  %s463_s2 = scalar_lea.vmem %s403_s30, 16  ;;  %s467_s3 = scalar_lea.vmem %s403_s30, 32 }
  0x15   :  { %v364_v23 = vadd.f32 %v363_v11, %v362_v14  ;;  %v29_v25 = vmax.f32 %v28_v19, %v597_v7  ;;  %v31_v28 = vsel %vm871_vm8, %v602_v8, -inf  ;;  %v41_v29 = vsel %vm871_vm8, %v611_v13, -inf  ;;  %v662_v32 = vld [vmem:[%s867_s0 + $0x78] sm:$0x3f]  ;;  %p464_p0 = scmp.ne.s32.totalorder %s403_s30, %s463_s2  ;;  %p468_p1 = scmp.lt.s32.totalorder %s403_s30, %s403_s30 }
  0x16   :  { %v386_v30 = vadd.f32 %v385_v21, %v383_v20  ;;  %v40_v33 = vmax.f32 %v39_v22, %v622_v17  ;;  %v49_v34 = vmax.f32 %v587_v5, %v617_v16  ;;  %v51_v35 = vsel %vm871_vm8, %v627_v18, -inf  ;;  %p469_p2 = scmp.lt.s32.totalorder %s467_s3, %s463_s2 }
  0x17   :  { %v367_v36 = vadd.f32 %v366_v12, %v364_v23  ;;  %v32_v37 = vmax.f32 %v29_v25, %v31_v28  ;;  %vm870_vm9 = vcmask 957440   ;;  %vm869_vm10 = vcmask 955392  }
  0x18   :  { %v42_v38 = vmax.f32 %v40_v33, %v41_v29  ;;  %v50_v39 = vmax.f32 %v49_v34, %v647_v27  ;;  %v60_v40 = vsel %vm870_vm9, %v637_v24, -inf  ;;  %v61_v41 = vsel %vm870_vm9, %v642_v26, -inf  ;;  %p470_p3 = por %p469_p2, %p468_p1 }
  0x19   :  { %368 = vadd.xlane.f32.xlu0 %v367_v36  ;;  %v33_v42 = vrot.slane %v32_v37, 4  ;;  %v62_v43 = vmax.f32 %v60_v40, %v61_v41  ;;  %v63_v44 = vsel %vm870_vm9, %v657_v31, -inf  ;;  %v66_v45 = vsel %vm869_vm10, %v662_v32, -inf }
  0x1a   :  { %v43_v46 = vrot.slane %v42_v38, 4  ;;  %v52_v47 = vmax.f32 %v50_v39, %v51_v35  ;;  %v679_v48 = vadd.s32 8, %v505_v4  ;;  %v682_v49 = vadd.s32 16, %v505_v4  ;;  %p471_p4 = pnand %p470_p3, %p464_p0 }
  0x1b   :  { %v34_v50 = vmax.f32 %v32_v37, %v33_v42  ;;  %v64_v51 = vmax.f32 %v62_v43, %v63_v44  ;;  %v685_v52 = vadd.s32 24, %v505_v4  ;;  %vm198_vm11 = vcmp.eq.s32.totalorder %v505_v4, %v553_v57 }
  0x1c   :  { %v44_v53 = vmax.f32 %v42_v38, %v43_v46  ;;  %v53_v54 = vrot.slane %v52_v47, 4  ;;  %vm199_vm12 = vcmp.eq.s32.totalorder %v505_v4, %v555_v58  ;;  %vm200_vm13 = vcmp.eq.s32.totalorder %v505_v4, %v557_v59 }
  0x1d   :  { %387 = vadd.xlane.f32.xlu0 %v386_v30  ;;  %v35_v55 = vrot.slane %v34_v50, 2  ;;  %v67_v56 = vmax.f32 %v64_v51, %v66_v45  ;;  %vm201_vm14 = vcmp.eq.s32.totalorder %v505_v4, %v559_v60  ;;  %vm202_vm15 = vcmp.eq.s32.totalorder %v679_v48, %v553_v57 }
  0x1e   :  { %v45_v0 = vrot.slane %v44_v53, 2  ;;  %v54_v1 = vmax.f32 %v52_v47, %v53_v54  ;;  %vm203_vm0 = vcmp.eq.s32.totalorder %v679_v48, %v555_v58  ;;  %vm204_vm1 = vcmp.eq.s32.totalorder %v679_v48, %v557_v59 }
  0x1f   :  { %v36_v2 = vmax.f32 %v34_v50, %v35_v55  ;;  %v68_v3 = vrot.slane %v67_v56, 4  ;;  %vm205_vm2 = vcmp.eq.s32.totalorder %v679_v48, %v559_v60  ;;  %vm206_vm3 = vcmp.eq.s32.totalorder %v682_v49, %v553_v57 }
  0x20   :  { %v46_v9 = vmax.f32 %v44_v53, %v45_v0  ;;  %v55_v10 = vrot.slane %v54_v1, 2  ;;  %vm207_vm4 = vcmp.eq.s32.totalorder %v682_v49, %v555_v58  ;;  %vm208_vm5 = vcmp.eq.s32.totalorder %v682_v49, %v557_v59 }
  0x21   :  { %v37_v11 = vrot.slane %v36_v2, 1  ;;  %v69_v12 = vmax.f32 %v67_v56, %v68_v3  ;;  %vm209_vm6 = vcmp.eq.s32.totalorder %v682_v49, %v559_v60  ;;  %vm210_vm7 = vcmp.eq.s32.totalorder %v685_v52, %v553_v57 }
  0x22   :  { %v47_v14 = vrot.slane %v46_v9, 1  ;;  %v56_v15 = vmax.f32 %v54_v1, %v55_v10  ;;  %vm211_vm10 = vcmp.eq.s32.totalorder %v685_v52, %v555_v58  ;;  %vm212_vm9 = vcmp.eq.s32.totalorder %v685_v52, %v557_v59 }
  0x23   :  { %v717_v19 = vmax.f32 %v36_v2, %v37_v11  ;;  %v70_v20 = vrot.slane %v69_v12, 2  ;;  %vm213_vm8 = vcmp.eq.s32.totalorder %v685_v52, %v559_v60  ;;  %v214_v23 = vsel %vm198_vm11, %v564_v61, 0.0 }
  0x24   :  { %v721_v21 = vmax.f32 %v46_v9, %v47_v14  ;;  %v57_v22 = vrot.slane %v56_v15, 1  ;;  %v731_v25 = vsel %vm199_vm12, %v569_v62, 0.0  ;;  %v741_v33 = vsel %vm200_vm13, %v587_v5, 0.0 }
  0x25   :  { %v71_v28 = vmax.f32 %v69_v12, %v70_v20  ;;  %v74_v29 = vsub.f32 %v564_v61, %v717_v19  ;;  %v78_v30 = vsub.f32 %v574_v63, %v717_v19  ;;  %v82_v61 = vsub.f32 %v597_v7, %v717_v19 }
  0x26   :  { %v743_v34 = vmax.f32 %v56_v15, %v57_v22  ;;  %v75_v35 = vsub.f32 %v569_v62, %v721_v21  ;;  %v79_v36 = vsub.f32 %v592_v6, %v721_v21  ;;  %v83_v38 = vsub.f32 %v622_v17, %v721_v21 }
  0x27   :  { %v72_v37 = vrot.slane %v71_v28, 1  ;;  %v86_v39 = vsub.f32 %v602_v8, %v717_v19  ;;  %v90_v40 = vmul.f32 1.442695, %v74_v29  ;;  %v87_v43 = vsub.f32 %v611_v13, %v721_v21 }
  0x28   :  { %v76_v41 = vsub.f32 %v587_v5, %v743_v34  ;;  %v80_v62 = vsub.f32 %v617_v16, %v743_v34  ;;  %v84_v42 = vsub.f32 %v647_v27, %v743_v34  ;;  %v88_v45 = vsub.f32 %v627_v18, %v743_v34 }
  0x29   :  { %v763_v44 = vmax.f32 %v71_v28, %v72_v37  ;;  %v92_v46 = vmul.f32 1.442695, %v75_v35  ;;  %v98_v47 = vmul.f32 1.442695, %v78_v30  ;;  %421 = vpow2.f32 %v90_v40 }
  0x2a   :  { %v94_v50 = vmul.f32 1.442695, %v76_v41  ;;  %v100_v51 = vmul.f32 1.442695, %v79_v36  ;;  %v102_v5 = vmul.f32 1.442695, %v80_v62 }
  0x2b   :  { %v77_v53 = vsub.f32 %v637_v24, %v763_v44  ;;  %v81_v54 = vsub.f32 %v642_v26, %v763_v44  ;;  %v85_v55 = vsub.f32 %v657_v31, %v763_v44  ;;  %v89_v56 = vsub.f32 %v662_v32, %v763_v44 }
  0x2c   :  { %423 = vpow2.f32 %v92_v46  ;;  %v106_v0 = vmul.f32 1.442695, %v82_v61  ;;  %v108_v1 = vmul.f32 1.442695, %v83_v38  ;;  %v110_v2 = vmul.f32 1.442695, %v84_v42 }
  0x2d   :  { %425 = vpow2.f32 %v94_v50  ;;  %v96_v3 = vmul.f32 1.442695, %v77_v53  ;;  %v104_v9 = vmul.f32 1.442695, %v81_v54  ;;  %v112_v10 = vmul.f32 1.442695, %v85_v55 }
  0x2e   :  { %427 = vpow2.f32 %v98_v47  ;;  %v114_v11 = vmul.f32 1.442695, %v86_v39  ;;  %v116_v12 = vmul.f32 1.442695, %v87_v43  ;;  %v118_v14 = vmul.f32 1.442695, %v88_v45 }
  0x2f   :  { %429 = vpow2.f32 %v96_v3  ;;  %v120_v15 = vmul.f32 1.442695, %v89_v56  ;;  %v217_v20 = vsel %vm201_vm14, %v637_v24, 0.0  ;;  %v218_v22 = vsel %vm202_vm15, %v574_v63, 0.0 }
  0x30   :  { %431 = vpow2.f32 %v100_v51  ;;  %v219_v28 = vsel %vm203_vm0, %v592_v6, 0.0  ;;  %v220_v29 = vsel %vm204_vm1, %v617_v16, 0.0  ;;  %v221_v4 = vsel %vm205_vm2, %v642_v26, 0.0 }
  0x31   :  { %433 = vpow2.f32 %v102_v5  ;;  %v222_v63 = vsel %vm206_vm3, %v597_v7, 0.0  ;;  %v223_v6 = vsel %vm207_vm4, %v622_v17, 0.0  ;;  %v224_v16 = vsel %vm208_vm5, %v647_v27, 0.0 }
  0x32   :  { %435 = vpow2.f32 %v104_v9  ;;  %v225_v24 = vsel %vm209_vm6, %v657_v31, 0.0  ;;  %v226_v7 = vsel %vm210_vm7, %v602_v8, 0.0  ;;  %v227_v17 = vsel %vm211_vm10, %v611_v13, 0.0 }
  0x33   :  { %437 = vpow2.f32 %v106_v0  ;;  %v228_v26 = vsel %vm212_vm9, %v627_v18, 0.0  ;;  %v229_v27 = vsel %vm213_vm8, %v662_v32, 0.0  ;;  %v230_v31 = vadd.f32 %v218_v22, %v214_v23 }
  0x34   :  { %439 = vpow2.f32 %v108_v1  ;;  %vm880_vm11 = vcmask 1045504   ;;  %v240_v8 = vadd.f32 %v219_v28, %v731_v25  ;;  %v250_v48 = vadd.f32 %v220_v29, %v741_v33 }
  0x35   :  { %v232_v57 = vsel %vm880_vm11, %v226_v7, 0.0  ;;  %vm881_vm12 = vmmov %vm880_vm11  ;;  %441 = vpow2.f32 %v110_v2  ;;  %v231_v13 = vadd.f32 %v230_v31, %v222_v63  ;;  %vm883_vm9 = vcmask 957440  }
  0x36   :  { %v242_v58 = vsel %vm881_vm12, %v227_v17, 0.0  ;;  %vm882_vm10 = vmmov %vm880_vm11  ;;  %443 = vpow2.f32 %v112_v10  ;;  %v241_v18 = vadd.f32 %v240_v8, %v223_v6  ;;  %v260_v49 = vsel %vm883_vm9, %v217_v20, 0.0  ;;  %v422_v32 = vpop.eup %421 }
  0x37   :  { %v252_v59 = vsel %vm882_vm10, %v228_v26, 0.0  ;;  %vm884_vm13 = vmmov %vm883_vm9  ;;  %445 = vpow2.f32 %v114_v11  ;;  %v834_v52 = vadd.f32 %v232_v57, %v231_v13  ;;  %v251_v23 = vadd.f32 %v250_v48, %v224_v16 }
  0x38   :  { %v261_v60 = vsel %vm884_vm13, %v221_v4, 0.0  ;;  %447 = vpow2.f32 %v116_v12  ;;  %v836_v30 = vadd.f32 %v242_v58, %v241_v18  ;;  %vm885_vm8 = vmmov %vm883_vm9  ;;  %vm886_vm14 = vcmask 955392  }
  0x39   :  { %v262_v25 = vadd.f32 %v261_v60, %v260_v49  ;;  %v263_v35 = vsel %vm885_vm8, %v225_v24, 0.0  ;;  %v265_v33 = vsel %vm886_vm14, %v229_v27, 0.0  ;;  %v424_v36 = vpop.eup %423  ;;  %449 = vpow2.f32 %v118_v14  ;;  %vm887_vm15 = vmmov %vm885_vm8 }
  0x3a   :  { %v840_v61 = vadd.f32 %v252_v59, %v251_v23  ;;  %v426_v38 = vpop.eup %425  ;;  %451 = vpow2.f32 %v120_v15  ;;  %vm888_vm0 = vmmov %vm885_vm8  ;;  %v234_v59 = vrot.slane %v834_v52, 4  ;;  %v244_v60 = vrot.slane %v836_v30, 4 }
  0x3b   :  { %v264_v37 = vadd.f32 %v263_v35, %v262_v25  ;;  %v428_v39 = vpop.eup %427  ;;  %vm889_vm1 = vmmov %vm888_vm0  ;;  %vm394_vm7 = vcmask 0  }
  0x3c   :  { %v430_v41 = vpop.eup %429  ;;  %v122_v43 = vadd.f32 %v428_v39, %v422_v32  ;;  %vm890_vm2 = vmmov %vm882_vm10  ;;  %v254_v25 = vrot.slane %v840_v61, 4  ;;  %v235_v39 = vadd.f32 %v234_v59, %v834_v52 }
  0x3d   :  { %v842_v40 = vadd.f32 %v265_v33, %v264_v37  ;;  %v432_v62 = vpop.eup %431  ;;  %v152_v45 = vsel %vm887_vm15, %v430_v41, 0.0  ;;  %vm891_vm3 = vmmov %vm890_vm2 }
  0x3e   :  { %v434_v42 = vpop.eup %433  ;;  %v132_v47 = vadd.f32 %v432_v62, %v424_v36  ;;  %vm892_vm4 = vmmov %vm890_vm2 }
  0x3f   :  { %v436_v46 = vpop.eup %435  ;;  %v142_v51 = vadd.f32 %v434_v42, %v426_v38  ;;  %vm893_vm5 = vmmov %vm886_vm14  ;;  %v267_v36 = vrot.slane %v842_v40, 4  ;;  %v245_v42 = vadd.f32 %v244_v60, %v836_v30 }
  0x40   :  { %v438_v50 = vpop.eup %437  ;;  %v153_v5 = vsel %vm888_vm0, %v436_v46, 0.0  ;;  %vm894_vm6 = vmmov %vm888_vm0 }
  0x41   :  { %v440_v53 = vpop.eup %439  ;;  %v154_v54 = vadd.f32 %v153_v5, %v152_v45  ;;  %v123_v56 = vadd.f32 %v438_v50, %v122_v43  ;;  %v255_v45 = vadd.f32 %v254_v25, %v840_v61  ;;  %v236_v50 = vrot.slane %v235_v39, 2 }
  0x42   :  { %v442_v55 = vpop.eup %441  ;;  %v133_v1 = vadd.f32 %v440_v53, %v132_v47  ;;  %v268_v47 = vadd.f32 %v267_v36, %v842_v40 }
  0x43   :  { %v444_v0 = vpop.eup %443  ;;  %v143_v3 = vadd.f32 %v442_v55, %v142_v51  ;;  %v246_v51 = vrot.slane %v245_v42, 2  ;;  %v256_v5 = vrot.slane %v255_v45, 2 }
  0x44   :  { %v446_v2 = vpop.eup %445  ;;  %v155_v9 = vsel %vm889_vm1, %v444_v0, 0.0  ;;  %v269_v53 = vrot.slane %v268_v47, 2 }
  0x45   :  { %v448_v10 = vpop.eup %447  ;;  %v124_v11 = vsel %vm890_vm2, %v446_v2, 0.0  ;;  %v156_v12 = vadd.f32 %v155_v9, %v154_v54  ;;  %v237_v54 = vadd.f32 %v236_v50, %v235_v39  ;;  %v247_v52 = vadd.f32 %v246_v51, %v245_v42 }
  0x46   :  { %v450_v14 = vpop.eup %449  ;;  %v125_v15 = vadd.f32 %v124_v11, %v123_v56  ;;  %v134_v20 = vsel %vm891_vm3, %v448_v10, 0.0  ;;  %v257_v55 = vadd.f32 %v256_v5, %v255_v45  ;;  %v270_v56 = vadd.f32 %v269_v53, %v268_v47 }
  0x47   :  { %v452_v22 = vpop.eup %451  ;;  %v135_v28 = vadd.f32 %v134_v20, %v133_v1  ;;  %v144_v29 = vsel %vm892_vm4, %v450_v14, 0.0  ;;  %v238_v0 = vrot.slane %v237_v54, 1  ;;  %v248_v30 = vrot.slane %v247_v52, 1 }
  0x48   :  { %v126_v4 = vrot.slane %v125_v15, 4  ;;  %v145_v63 = vadd.f32 %v144_v29, %v143_v3  ;;  %v157_v6 = vsel %vm893_vm5, %v452_v22, 0.0  ;;  %v258_v1 = vrot.slane %v257_v55, 1 }
  0x49   :  { %v136_v16 = vrot.slane %v135_v28, 4  ;;  %v158_v24 = vadd.f32 %v157_v6, %v156_v12  ;;  %v271_v3 = vrot.slane %v270_v56, 1  ;;  %v239_v10 = vadd.f32 %v238_v0, %v237_v54 }
  0x4a   :  { %v127_v7 = vadd.f32 %v126_v4, %v125_v15  ;;  %v146_v17 = vrot.slane %v145_v63, 4  ;;  %v249_v12 = vadd.f32 %v248_v30, %v247_v52  ;;  %v259_v22 = vadd.f32 %v258_v1, %v257_v55 }
  0x4b   :  { %v137_v26 = vadd.f32 %v136_v16, %v135_v28  ;;  %v159_v27 = vrot.slane %v158_v24, 4  ;;  %v272_v4 = vadd.f32 %v271_v3, %v270_v56 }
  0x4c   :  { %v128_v31 = vrot.slane %v127_v7, 2  ;;  %v147_v57 = vadd.f32 %v146_v17, %v145_v63 }
  0x4d   :  { %v138_v8 = vrot.slane %v137_v26, 2  ;;  %v160_v58 = vadd.f32 %v159_v27, %v158_v24 }
  0x4e   :  { %v129_v13 = vadd.f32 %v128_v31, %v127_v7  ;;  %v148_v48 = vrot.slane %v147_v57, 2 }
  0x4f   :  { %v139_v18 = vadd.f32 %v138_v8, %v137_v26  ;;  %v161_v49 = vrot.slane %v160_v58, 2 }
  0x50   :  { %v130_v32 = vrot.slane %v129_v13, 1  ;;  %v149_v23 = vadd.f32 %v148_v48, %v147_v57 }
  0x51   :  { %v140_v35 = vrot.slane %v139_v18, 1  ;;  %v162_v33 = vadd.f32 %v161_v49, %v160_v58 }
  0x52   :  { %v131_v37 = vadd.f32 %v130_v32, %v129_v13  ;;  %v150_v38 = vrot.slane %v149_v23, 1 }
  0x53   :  { %v141_v41 = vadd.f32 %v140_v35, %v139_v18  ;;  %v163_v62 = vrot.slane %v162_v33, 1 }
  0x54   :  { %v151_v43 = vadd.f32 %v150_v38, %v149_v23  ;;  %453 = vlog2.f32 %v131_v37 }
  0x55   :  { %v164_v46 = vadd.f32 %v163_v62, %v162_v33  ;;  %455 = vlog2.f32 %v141_v41 }
  0x56   :  { %457 = vlog2.f32 %v151_v43 }
  0x57   :  { %459 = vlog2.f32 %v164_v46 }
  0x61   :  { %v454_v2 = vpop.eup %453 }
  0x62   :  { %v456_v61 = vpop.eup %455  ;;  %v166_v9 = vmul.f32 0.6931472, %v454_v2 }
  0x63   :  { %v458_v11 = vpop.eup %457  ;;  %v168_v40 = vmul.f32 0.6931472, %v456_v61 }
  0x64   :  { %v460_v14 = vpop.eup %459  ;;  %v170_v15 = vmul.f32 0.6931472, %v458_v11  ;;  %v173_v20 = vadd.f32 %v166_v9, %v717_v19 }
  0x65   :  { %v172_v28 = vmul.f32 0.6931472, %v460_v14  ;;  %v174_v29 = vadd.f32 %v168_v40, %v721_v21 }
  0x66   :  { %v175_v63 = vadd.f32 %v170_v15, %v743_v34  ;;  %v273_v6 = vsub.f32 %v173_v20, %v239_v10 }
  0x67   :  { %v176_v16 = vadd.f32 %v172_v28, %v763_v44  ;;  %v274_v24 = vsub.f32 %v174_v29, %v249_v12 }
  0x68   :  { %v275_v7 = vsub.f32 %v175_v63, %v259_v22 }
  0x69   :  { %v276_v17 = vsub.f32 %v176_v16, %v272_v4  ;;  %v277_v26 = vadd.f32 %v274_v24, %v273_v6 }
  0x6b   :  { %v278_v27 = vadd.f32 %v277_v26, %v275_v7  ;;  %v279_v31 = vsel %vm894_vm6, %v276_v17, 0.0 }
  0x6d   :  { %v280_v57 = vadd.f32 %v279_v31, %v278_v27 }
  0x6f   :  { %281 = vadd.xlane.f32.xlu1 %v280_v57 }
  0xa2   :  { %v369_v19 = vpop.xlane.xlu0 %368 }
  0xa3   :  { %v370_v8 = vrot.slane %v369_v19, 4 }
  0xa5   :  { %v371_v58 = vadd.f32 %v370_v8, %v369_v19 }
  0xa6   :  { %v388_v34 = vpop.xlane.xlu0 %387 }
  0xa7   :  { %v372_v13 = vrot.slane %v371_v58, 2  ;;  %v390_v18 = vadd.f32 1e-12, %v388_v34 }
  0xa9   :  { %v373_v21 = vadd.f32 %v372_v13, %v371_v58  ;;  %461 = vrcp.f32 %v390_v18 }
  0xab   :  { %v374_v48 = vrot.slane %v373_v21, 1 }
  0xad   :  { %v375_v59 = vadd.f32 %v374_v48, %v373_v21 }
  0xaf   :  { %418 = vpush %v375_v59 }
  0xb6   :  { %v462_v60 = vpop.eup %461 }
  0xe0   :  { %s419_s0 = spop %418 }
  0xe1   :  { %v377_v44 = vstv %s419_s0 }
  0xe2   :  { %v389_v49 = vmul.f32 0.000998004, %v377_v44 }
  0xe4   :  { %v392_v32 = vmul.f32 %v462_v60, %v389_v49 }
  0xf8   :  { %v282_v23 = vpop.xlane.xlu1 %281 }
  0xf9   :  { %v283_v25 = vmul.f32 0.001996008, %v282_v23 }
  0xfb   :  { %v393_v35 = vadd.f32 %v392_v32, %v283_v25 }
  0xfd   :  { %395 = vst.msk [vmem:[#allocation2] sm:$0x1] %vm394_vm7, %v393_v35 }
  0xfe   :  { %474 = shalt.err (!%p471_p4)
}
  0xff   :  { %405 = dma.vmem_to_hbm [thread:$0]  %s403_s30, 16, %s868_s1, [#allocation3]  }
 0x100   :  { %483 = dma.done.wait [#allocation3], 16  }
 0x101   :  { %484 = vsyncadd [#allocation3], 4294967280 }
 0x102   :  { %409 = vsyncpa [#allocation3], 1 }

</bundles_post_ra>
